<compile_context>
chip_gen: v5e
topology: v5e:2x2
jax: 0.10.0
libtpu: 0.0.40
codegen_flags: <defaults>
</compile_context>

<pallas_src>
import jax
import jax.numpy as jnp
from jax.experimental import pallas as pl
from jax.experimental.pallas import tpu as pltpu


def _decoder_kernel(enc_ref, x_ref, we_ref, wx_ref, b_ref, o_ref):
    # enc_ref: (Ce, TP)   x_ref: (Cx, TP)
    # we_ref:  (Cout, Ce) wx_ref: (Cout, Cx)   b_ref: (Cout, 1)
    # o_ref:   (Cout, TP)   -- pixels on the lane axis (TP multiple of 128)
    acc = jnp.dot(we_ref[...], enc_ref[...], preferred_element_type=jnp.float32)
    acc = acc + jnp.dot(wx_ref[...], x_ref[...], preferred_element_type=jnp.float32)
    o_ref[...] = jnp.tanh(acc + b_ref[...]).astype(o_ref.dtype)


def _round_up(v, m):
    return ((v + m - 1) // m) * m


def _conv1x1_tanh_pallas(enc, xp, w_e, w_x, b, *, tp_target=2048):
    """
    enc: (N, Ce, P)   xp: (N, Cx, P)   w_e: (Cout, Ce)   w_x: (Cout, Cx)
    b:   (Cout, 1)
    Returns (N, Cout, P) with the same dtype as `enc`.
    """
    N, Ce, P = enc.shape
    Cx = xp.shape[1]
    Cout = w_e.shape[0]
    out_dtype = enc.dtype

    # Lane-dense pixel tile: multiple of 128, as large as practical (sweepable).
    tp = min(tp_target, _round_up(P, 128))
    P_pad = _round_up(P, tp)
    if P_pad != P:
        enc = jnp.pad(enc, ((0, 0), (0, 0), (0, P_pad - P)))
        xp = jnp.pad(xp, ((0, 0), (0, 0), (0, P_pad - P)))

    Cin = Ce + Cx
    M = N * P
    itemsize = jnp.dtype(out_dtype).itemsize
    cost = pl.CostEstimate(
        flops=2 * M * Cin * Cout,
        transcendentals=M * Cout,
        bytes_accessed=itemsize * M * (Cin + Cout),
    )

    out = pl.pallas_call(
        _decoder_kernel,
        out_shape=jax.ShapeDtypeStruct((N, Cout, P_pad), out_dtype),
        grid_spec=pltpu.PrefetchScalarGridSpec(
            num_scalar_prefetch=0,
            grid=(N, P_pad // tp),
            in_specs=[
                pl.BlockSpec((None, Ce, tp), lambda n, p: (n, 0, p)),   # enc_x tile
                pl.BlockSpec((None, Cx, tp), lambda n, p: (n, 0, p)),   # padded x tile
                pl.BlockSpec((Cout, Ce), lambda n, p: (0, 0)),          # W_e (tiny, resident)
                pl.BlockSpec((Cout, Cx), lambda n, p: (0, 0)),          # W_x
                pl.BlockSpec((Cout, 1), lambda n, p: (0, 0)),           # bias
            ],
            out_specs=pl.BlockSpec((None, Cout, tp), lambda n, p: (n, 0, p)),
        ),
        compiler_params=pltpu.CompilerParams(
            dimension_semantics=("parallel", "parallel"),
        ),
        cost_estimate=cost,
    )(enc, xp, w_e, w_x, b)

    if P_pad != P:
        out = out[:, :, :P]
    return out


def output_decoder_forward(x, enc_x, weight, bias):
    """
    Mirrors OutputDecoder.forward.
      x:      (N, Cx, Hx, Wx)  NCHW
      enc_x:  (N, Ce, He, We)  NCHW  (He >= Hx, We >= Wx)
      weight: (Cout, Ce+Cx, 1, 1)  PyTorch Conv2d weight layout
      bias:   (Cout,)
    Returns (N, Cout, He, We) NCHW.
    """
    N, Cx, Hx, Wx = x.shape
    _, Ce, He, We = enc_x.shape
    Cout = weight.shape[0]
    Cin = Ce + Cx

    # F.pad([left, right, top, bottom]) semantics.
    diff_h = He - Hx
    diff_w = We - Wx
    if diff_h > 0 or diff_w > 0:
        x = jnp.pad(
            x,
            ((0, 0), (0, 0),
             (diff_h // 2, diff_h - diff_h // 2),
             (diff_w // 2, diff_w - diff_w // 2)),
        )
    # TODO(synk): the spatial pad could be fused into the kernel (index_map
    # offsets / border masking), but it only touches the Cx fraction of data.

    P = He * We
    compute_dtype = enc_x.dtype
    enc = enc_x.reshape(N, Ce, P)                       # pure reshape, no transpose
    xp = x.astype(compute_dtype).reshape(N, Cx, P)

    # Conv2d 1x1 weight (Cout, Cin, 1, 1) -> (Cout, Cin), split so that the
    # in-kernel W_e@enc + W_x@x matches the [enc_x, x] concat order exactly.
    w = weight.reshape(Cout, Cin).astype(compute_dtype)
    w_e = w[:, :Ce]
    w_x = w[:, Ce:]
    b = bias.reshape(Cout, 1).astype(jnp.float32)

    out = _conv1x1_tanh_pallas(enc, xp, w_e, w_x, b)
    return out.reshape(N, Cout, He, We)                 # pure reshape, no transpose


if __name__ == "__main__":
    key = jax.random.PRNGKey(0)
    k1, k2, k3, k4 = jax.random.split(key, 4)

    # Small shapes consistent with the module: x is spatially smaller than
    # enc_x so the padding path is exercised.
    N, Cx, Ce, Cout = 2, 4, 4, 3
    He, We = 16, 16
    Hx, Wx = 14, 14
    Cin = Ce + Cx

    x = jax.random.normal(k1, (N, Cx, Hx, Wx), dtype=jnp.float32)
    enc_x = jax.random.normal(k2, (N, Ce, He, We), dtype=jnp.float32)

    # Deterministic synthetic Conv2d(Cin, Cout, kernel_size=1) parameters.
    weight = 0.1 * jax.random.normal(k3, (Cout, Cin, 1, 1), dtype=jnp.float32)
    bias = 0.1 * jax.random.normal(k4, (Cout,), dtype=jnp.float32)

    out = output_decoder_forward(x, enc_x, weight, bias)
    out = jax.block_until_ready(out)

    # Pure-JAX reference check (same math, no Pallas).
    x_p = jnp.pad(x, ((0, 0), (0, 0), (1, 1), (1, 1)))
    xc = jnp.concatenate([enc_x, x_p], axis=1)
    ref = jnp.tanh(
        jnp.einsum("nchw,oc->nohw", xc, weight.reshape(Cout, Cin))
        + bias.reshape(1, Cout, 1, 1)
    )
    assert out.shape == (N, Cout, He, We)
    assert jnp.allclose(out, ref, atol=1e-5, rtol=1e-5)

    print("KERNEL_OK")
</pallas_src>

<mosaic_0001>
module attributes {stable_mosaic.version = 11 : i64} {
  func.func @_decoder_kernel(%arg0: i32, %arg1: i32, %arg2: memref<1x4x256xf32, #tpu.memory_space<vmem>>, %arg3: memref<1x4x256xf32, #tpu.memory_space<vmem>>, %arg4: memref<3x4xf32, #tpu.memory_space<vmem>>, %arg5: memref<3x4xf32, #tpu.memory_space<vmem>>, %arg6: memref<3x1xf32, #tpu.memory_space<vmem>>, %arg7: memref<1x3x256xf32, #tpu.memory_space<vmem>>) attributes {dimension_semantics = [#tpu.dimension_semantics<parallel>, #tpu.dimension_semantics<parallel>], iteration_bounds = array<i64: 2, 1>, scalar_prefetch = 0 : i64, scratch_operands = 0 : i64, tpu.core_type = #tpu.core_type<tc>, window_params = [{transform_indices = @transform_0, window_bounds = array<i64: 1, 4, 256>}, {transform_indices = @transform_1, window_bounds = array<i64: 1, 4, 256>}, {pipeline_mode = #tpu.pipeline_mode<synchronous>, transform_indices = @transform_2, window_bounds = array<i64: 3, 4>}, {pipeline_mode = #tpu.pipeline_mode<synchronous>, transform_indices = @transform_3, window_bounds = array<i64: 3, 4>}, {pipeline_mode = #tpu.pipeline_mode<synchronous>, transform_indices = @transform_4, window_bounds = array<i64: 3, 1>}, {transform_indices = @transform_5, window_bounds = array<i64: 1, 3, 256>}]} {
    %c0 = arith.constant 0 : index
    %c0_0 = arith.constant 0 : index
    %0 = vector.load %arg4[%c0, %c0_0] : memref<3x4xf32, #tpu.memory_space<vmem>>, vector<3x4xf32>
    %c0_1 = arith.constant 0 : index
    %c0_2 = arith.constant 0 : index
    %c0_3 = arith.constant 0 : index
    %1 = vector.load %arg2[%c0_1, %c0_2, %c0_3] : memref<1x4x256xf32, #tpu.memory_space<vmem>>, vector<1x4x256xf32>
    %2 = vector.shape_cast %1 : vector<1x4x256xf32> to vector<4x256xf32>
    %cst = arith.constant dense<0.000000e+00> : vector<3x256xf32>
    %3 = tpu.matmul %0, %2, %cst {dimension_numbers = #tpu.dot_dimension_numbers<[1], [0], [0], [1], [0, 0, 1, 1], [], []>} : vector<3x4xf32>, vector<4x256xf32>, vector<3x256xf32> -> vector<3x256xf32>
    %c0_4 = arith.constant 0 : index
    %c0_5 = arith.constant 0 : index
    %4 = vector.load %arg5[%c0_4, %c0_5] : memref<3x4xf32, #tpu.memory_space<vmem>>, vector<3x4xf32>
    %c0_6 = arith.constant 0 : index
    %c0_7 = arith.constant 0 : index
    %c0_8 = arith.constant 0 : index
    %5 = vector.load %arg3[%c0_6, %c0_7, %c0_8] : memref<1x4x256xf32, #tpu.memory_space<vmem>>, vector<1x4x256xf32>
    %6 = vector.shape_cast %5 : vector<1x4x256xf32> to vector<4x256xf32>
    %cst_9 = arith.constant dense<0.000000e+00> : vector<3x256xf32>
    %7 = tpu.matmul %4, %6, %cst_9 {dimension_numbers = #tpu.dot_dimension_numbers<[1], [0], [0], [1], [0, 0, 1, 1], [], []>} : vector<3x4xf32>, vector<4x256xf32>, vector<3x256xf32> -> vector<3x256xf32>
    %8 = arith.addf %3, %7 : vector<3x256xf32>
    %c0_10 = arith.constant 0 : index
    %c0_11 = arith.constant 0 : index
    %9 = vector.load %arg6[%c0_10, %c0_11] : memref<3x1xf32, #tpu.memory_space<vmem>>, vector<3x1xf32>
    %10 = vector.broadcast %9 : vector<3x1xf32> to vector<3x256xf32>
    %11 = arith.addf %8, %10 : vector<3x256xf32>
    %12 = math.tanh %11 : vector<3x256xf32>
    %c0_12 = arith.constant 0 : index
    %c0_13 = arith.constant 0 : index
    %c0_14 = arith.constant 0 : index
    %13 = vector.load %arg7[%c0_12, %c0_13, %c0_14] : memref<1x3x256xf32, #tpu.memory_space<vmem>>, vector<1x3x256xf32>
    %14 = vector.shape_cast %13 : vector<1x3x256xf32> to vector<3x256xf32>
    %15 = vector.shape_cast %12 : vector<3x256xf32> to vector<1x3x256xf32>
    tpu.vector_store %arg7[%c0_12, %c0_13, %c0_14], %15 {strides = array<i32>} : memref<1x3x256xf32, #tpu.memory_space<vmem>>, vector<1x3x256xf32>,
    return
  }
  func.func @transform_0(%arg0: i32, %arg1: i32) -> (i32, i32, i32) {
    %c0_i32 = arith.constant 0 : i32
    %c0_i32_0 = arith.constant 0 : i32
    return %arg0, %c0_i32, %arg1 : i32, i32, i32
  }
  func.func @transform_1(%arg0: i32, %arg1: i32) -> (i32, i32, i32) {
    %c0_i32 = arith.constant 0 : i32
    %c0_i32_0 = arith.constant 0 : i32
    return %arg0, %c0_i32, %arg1 : i32, i32, i32
  }
  func.func @transform_2(%arg0: i32, %arg1: i32) -> (i32, i32) {
    %c0_i32 = arith.constant 0 : i32
    %c0_i32_0 = arith.constant 0 : i32
    %c0_i32_1 = arith.constant 0 : i32
    return %c0_i32, %c0_i32_0 : i32, i32
  }
  func.func @transform_3(%arg0: i32, %arg1: i32) -> (i32, i32) {
    %c0_i32 = arith.constant 0 : i32
    %c0_i32_0 = arith.constant 0 : i32
    %c0_i32_1 = arith.constant 0 : i32
    return %c0_i32, %c0_i32_0 : i32, i32
  }
  func.func @transform_4(%arg0: i32, %arg1: i32) -> (i32, i32) {
    %c0_i32 = arith.constant 0 : i32
    %c0_i32_0 = arith.constant 0 : i32
    %c0_i32_1 = arith.constant 0 : i32
    return %c0_i32, %c0_i32_0 : i32, i32
  }
  func.func @transform_5(%arg0: i32, %arg1: i32) -> (i32, i32, i32) {
    %c0_i32 = arith.constant 0 : i32
    %c0_i32_0 = arith.constant 0 : i32
    return %arg0, %c0_i32, %arg1 : i32, i32, i32
  }
}

</mosaic_0001>

<bundles_post_ra>
// kernel: tpu_custom_call.1
= control target key start
LH: loop header
LB: loop body
LE: loop exit
PB: predicated region body
PF: predicated region fallthrough
CT: control target
= control target key end

     0   :  { %s1011_s0 = inlined_call_operand.hbm [shape: f32[2,4,256], index: 0, kind: input, shape index: {}]   ;;  %s1012_s1 = inlined_call_operand.hbm [shape: f32[2,4,256], index: 1, kind: input, shape index: {}]   ;;  %s1013_s2 = inlined_call_operand.vmem [shape: f32[3,4], index: 2, kind: input, shape index: {}]   ;;  %s1014_s3 = inlined_call_operand.hbm [shape: f32[3,4], index: 3, kind: input, shape index: {}]   ;;  %s1015_s4 = inlined_call_operand.vmem [shape: f32[3,1], index: 4, kind: input, shape index: {}]   ;;  %s1016_s5 = inlined_call_operand.vmem [shape: f32[2,3,256], index: 5, kind: output, shape index: {}]  }
   0x1   :  { %1020 = sst [smem:[#allocation12_spill]] %s1014_s3 }
   0x2   :  { %10 = vsyncpa [#allocation3], 0 }
   0x3   :  { %12 = vsyncpa [#allocation3 + $0x1], 0 }
   0x4   :  { %13 = vsyncpa [#allocation5], 0 }
   0x5   :  { %15 = vsyncpa [#allocation5 + $0x1], 0  ;;  %s875_s18 = smov 0   ;;  %s877_s19 = smov 0  }
   0x6   :  { %s879_s20 = smov 0   ;;  %s881_s21 = smov 0  }
   0x7   :  { %s883_s22 = smov 0   ;;  %s885_s23 = smov 0  }
   0x8 LB: > { %1021 = sst [smem:[#allocation10_spill]] %s837_s22  ;;  %s1017_s24 = sadd.s32 4294967295, %s841_s23   ;;  %s841_s23 = sphi %s885_s23, %s21_s23   ;;  %s837_s22 = sphi %s883_s22, %s1030_s22   ;;  %s833_s21 = sphi %s881_s21, %s1029_s21   ;;  %s829_s20 = sphi %s879_s20, %s1033_s20   ;;  %s825_s19 = sphi %s877_s19, %s1032_s19   ;;  %s821_s18 = sphi %s875_s18, %s1031_s18  }
   0x9   : > { %p55_p0 = scmp.ne.s32.totalorder %s825_s19, %s821_s18  ;;  %p907_p1 = scmp.eq.s32.totalorder %s1017_s24, 0 }
   0xa   : > { %p588_p2 = scmp.ge.s32.totalorder %s841_s23, 1  ;;  %p185_p3 = scmp.lt.s32.totalorder %s841_s23, 3 }
   0xb   : > { %p915_p4 = por %p907_p1, %p55_p0  ;;  %s1024_s3 = sld [smem:[#allocation12_spill]] }
   0xc   : > { %p922_p5 = pnand %p588_p2, %p185_p3  ;;  %s843_s6 = smov [#allocation6]  }
   0xd   : > { %s202_s7 = sshll.u32 %s843_s6, 4  ;;  %s33_s8 = sadd.s32 1, %s837_s22  ;;  %s203_s7 = int_to_ptr.vmem [resolvable:$true] %s202_s7 }
   0xe   : > { %p624_p6 = pneg %p922_p5  ;;  %p35_p8 = scmp.ge.s32.totalorder %s33_s8, 2 }
   0xf   : > { %s42_s9 = sadd.s32 1, %s829_s20  ;;  %p49_p9 = scmp.ne.s32.totalorder %s829_s20, %s825_s19 }
  0x10   : > { %p625_p7 = pnand %p624_p6, %p907_p1  ;;  %p50_p10 = scmp.eq.s32.totalorder %s841_s23, 0 }
  0x11   : > { %s200_s29 = sshll.u32 %s1024_s3, 4  ;;  %s1035_s8 = smov (%p35_p8, %s33_s8), 0  ;;  %s201_s29 = int_to_ptr.hbm [resolvable:$true] %s200_s29 }
  0x12   : > { %627 = dma.hbm_to_vmem [thread:$0]  (!%p625_p7), %s201_s29, 64, %s203_s7, [#allocation5]  }
  0x13   : > { %1026 = sst [smem:[#allocation11_spill]] %s1035_s8  ;;  %p937_p11 = por %p50_p10, %p49_p9 }
  0x14   : > { %p636_p12 = scmp.lt.s32.totalorder %s841_s23, 2  ;;  %s37_s11 = ssub.s32 %s837_s22, %s1035_s8 }
  0x15   : > { %s216_s12 = sand.u32 1, %s829_s20   ;;  %p40_p13 = scmp.eq.s32.totalorder %s37_s11, 0 }
  0x16   : > { %s591_s13 = sshll.u32 %s216_s12, 3  ;;  %s613_s14 = sshll.u32 %s837_s22, 3 }
  0x17   : > { %s947_s15 = scalar_select %p40_p13, %s829_s20, %s42_s9  }
  0x18   : > { %s227_s18 = scalar_lea.hbm %s1011_s0, %s613_s14  ;;  %s220_s28 = scalar_lea.vmem [#allocation2], %s591_s13 }
  0x19   : > { %s229_s27 = sshll.u32 %s227_s18, 4  ;;  %s231_s29 = sshll.u32 %s220_s28, 4  ;;  %s230_s27 = int_to_ptr.hbm [resolvable:$true] %s229_s27  ;;  %s232_s29 = int_to_ptr.vmem [resolvable:$true] %s231_s29 }
  0x1a   : > { %p629_p0 = pnand %p636_p12, %p937_p11  ;;  %s249_s11 = scalar_lea.hbm %s1012_s1, %s613_s14 }
  0x1b   : > { %s238_s24 = sand.u32 1, %s841_s23   ;;  %s217_s3 = scalar_lea.sflag [#allocation3], %s216_s12 }
  0x1c   : > { %631 = dma.hbm_to_vmem [thread:$0]  (!%p629_p0), %s230_s27, 128, %s232_s29, %s217_s3  }
  0x1d   : > { %s251_s9 = sshll.u32 %s249_s11, 4  ;;  %s242_s8 = scalar_lea.vmem [#allocation4], %s591_s13  ;;  %s252_s9 = int_to_ptr.hbm [resolvable:$true] %s251_s9 }
  0x1e   : > { %s253_s22 = sshll.u32 %s242_s8, 4  ;;  %s239_s16 = scalar_lea.sflag [#allocation5], %s238_s24  ;;  %s254_s22 = int_to_ptr.vmem [resolvable:$true] %s253_s22 }
  0x1f   : > { %634 = dma.hbm_to_vmem [thread:$0]  (!%p629_p0), %s252_s9, 128, %s254_s22, %s239_s16  }
  0x20   : > { %262 = sbr.rel (%p922_p5) target bundleno = 209 (0xd1), region = 40  ;;  %s264_s10 = sand.u32 (!%p922_p5), 1, %s825_s19  }
  0x21   : > { %s598_s17 = sshll.u32 (!%p922_p5), %s264_s10, 3  ;;  %s265_s18 = scalar_lea.sflag (!%p922_p5), [#allocation3], %s264_s10 }
  0x22   : > { %s268_s28 = scalar_lea.vmem (!%p922_p5), [#allocation2], %s598_s17 }
  0x25   : > { %808 = dma.done.wait (%p915_p4), %s265_s18, 128  }
  0x26   : > { %810 = vsyncadd (%p915_p4), %s265_s18, 4294967168  ;;  %s1028_s3 = sadd.s32 4294967295, %s841_s23   ;;  %s278_s22 = scalar_lea.vmem [#allocation4], %s598_s17 }
  0x27   : > { %s274_s8 = sand.u32 1, %s1028_s3  }
  0x28   : > { %s275_s24 = scalar_lea.sflag [#allocation5], %s274_s8 }
  0x29   : > { %812 = dma.done.wait (%p915_p4), %s275_s24, 128  }
  0x2a   : > { %814 = vsyncadd (%p915_p4), %s275_s24, 4294967168 }
  0x2b   : > { %816 = dma.done.wait (%p907_p1), [#allocation5], 64  }
  0x2c   : > { %818 = vsyncadd (%p907_p1), [#allocation5], 4294967232  ;;  %v844_v0 = vmov 0   ;;  %v335_v1 = vld [vmem:[%s278_s22] sm:$0xff]  ;;  %v333_v3 = vld [vmem:[%s268_s28] sm:$0xff]  ;;  %vm344_vm0 = vcmask 1043456  }
  0x2d   : > { %688 = vset.pattern.permute.xlu0 %v844_v0  ;;  %337 = vst [vmem:[#allocation1] ss:$2 sm:$0xff] %v335_v1  ;;  %v440_v2 = vld [vmem:[%s1015_s4] sm:$0x7]  ;;  %v334_v4 = vld [vmem:[#allocation6] sm:$0x7] }
  0x2e   : > { %443 = vperm.xlu0 %688, %v440_v2   ;;  %vm340_vm1 = vcmask 31744   ;;  %v332_v7 = vld [vmem:[%s1013_s2] sm:$0x7]  ;;  %p323_p1 = scmp.lt.s32.totalorder %s833_s21, 1 }
  0x30   : > { %s1037_s21 = smov (!%p323_p1, %s833_s21), 1 }
  0x31   : > { %s615_s13 = sshll.u32 %s1037_s21, 3 }
  0x32   : > { %s330_s29 = scalar_lea.vmem %s1016_s5, %s615_s13 }
  0x34   : > { %v338_v5 = vld.sshfl [vmem:[#allocation1] sm:$0xff pattern:$0x75316420]  ;;  %v339_v6 = vld.sshfl [vmem:[#allocation1 + $0x8] sm:$0xff pattern:$0x75316420] }
  0x35   : > { %390 = vst [vmem:[#allocation1] ss:$2 sm:$0xff] %v333_v3  ;;  %603 = vmatpush.msk.msra.mxu0 %vm344_vm0, %v338_v5  ;;  %605 = vmatpush.msk.msra.mxu1 %vm344_vm0, %v339_v6 }
  0x36   : > { %604 = vmatmul.msk.f32.vlgmr.msra.gmra.mxu0 %vm340_vm1, %v334_v4  ;;  %606 = vmatmul.msk.f32.vlgmr.msra.gmra.mxu1 %vm340_vm1, %v334_v4 }
  0x3c   : > { %v391_v8 = vld.sshfl [vmem:[#allocation1] sm:$0xff pattern:$0x75316420]  ;;  %v392_v9 = vld.sshfl [vmem:[#allocation1 + $0x8] sm:$0xff pattern:$0x75316420] }
  0x3d   : > { %607 = vmatpush.msk.msra.mxu2 %vm344_vm0, %v391_v8  ;;  %609 = vmatpush.msk.msra.mxu3 %vm344_vm0, %v392_v9 }
  0x3e   : > { %608 = vmatmul.msk.f32.vlgmr.msra.gmra.mxu2 %vm340_vm1, %v332_v7  ;;  %610 = vmatmul.msk.f32.vlgmr.msra.gmra.mxu3 %vm340_vm1, %v332_v7 }
  0xa0   : > { %v444_v12 = vpop.permute.xlu0 %443 }
  0xb3   : > { %v366_v10 = vpop.f32.mrf.mxu0  ;;  %v386_v11 = vpop.f32.mrf.mxu1 }
  0xc1   : > { %v417_v13 = vpop.f32.mrf.mxu2  ;;  %v437_v14 = vpop.f32.mrf.mxu3 }
  0xc2   : > { %v418_v15 = vadd.f32 %v417_v13, %v366_v10  ;;  %v438_v16 = vadd.f32 %v437_v14, %v386_v11 }
  0xc4   : > { %v447_v17 = vadd.f32 %v444_v12, %v438_v16  ;;  %v446_v18 = vadd.f32 %v444_v12, %v418_v15 }
  0xc6   : > { %689 = vtanh.f32 %v447_v17 }
  0xc7   : > { %691 = vtanh.f32 %v446_v18 }
  0xcc   : > { %v690_v19 = vpop.eup %689 }
  0xcd   : > { %v452_v20 = vrot.slane %v690_v19, 4  ;;  %v692_v21 = vpop.eup %691 }
  0xcf   : > { %v453_v22 = vsel %vm344_vm0, %v692_v21, %v452_v20 }
  0xd0   : > { %455 = vst [vmem:[%s330_s29] sm:$0x77] %v453_v22 }
  0xd1 PF: > { %s21_s23 = sadd.s32 1, %s841_s23   ;;  %s1029_s21 = sld [smem:[#allocation10_spill]] }
  0xd2   : > { %p18_p2 = scmp.ge.s32.totalorder %s21_s23, 4   ;;  %s1030_s22 = sld [smem:[#allocation11_spill]] }
  0xd3   : > { %s1031_s18 = smov %s825_s19  ;;  %s1032_s19 = smov %s829_s20 }
  0xd4   : > { %s1033_s20 = smov %s947_s15  ;;  %20 = sbr.rel (!%p18_p2) target bundleno = 8 (0x8), region = 97 }
  0xd9   :  { %486 = vsyncpa [#allocation3], 1 }
  0xda   :  { %488 = vsyncpa [#allocation3 + $0x1], 1 }
  0xdb   :  { %489 = vsyncpa [#allocation5], 1 }
  0xdc   :  { %491 = vsyncpa [#allocation5 + $0x1], 1 }

</bundles_post_ra>
